<compile_context>
chip_gen: v6e
topology: v6e:2x2x1
jax: 0.10.0
libtpu: 0.0.40
codegen_flags: <defaults>
</compile_context>

<pallas_src>
import functools

import jax
import jax.numpy as jnp
from jax.experimental import pallas as pl
from jax.experimental.pallas import tpu as pltpu


def _channel_attention_kernel(x_ref, w1t_ref, w2t_ref, out_ref,
                              sum_acc, max_acc, *, hw):
    # x_ref:   (1, C, HW_CHUNK)  one batch row, one spatial chunk
    # w1t_ref: (C, C_red)        pre-transposed 1x1-conv weight (resident)
    # w2t_ref: (C_red, C)        pre-transposed 1x1-conv weight (resident)
    # out_ref: (1, 1, C)         channel-attention for this batch row
    # sum_acc / max_acc: (1, C)  f32 running reductions across spatial chunks
    k = pl.program_id(1)

    @pl.when(k == 0)
    def _():
        sum_acc[...] = jnp.zeros_like(sum_acc)
        max_acc[...] = jnp.full_like(max_acc, -jnp.inf)

    # Chunk-wise reduction: never materialize full-x in f32, keep only one
    # chunk's worth of vregs live. Lane reductions ride the XLU slot while the
    # next chunk's DMA is in flight.
    chunk = x_ref[...].astype(jnp.float32)                 # (1, C, HW_CHUNK)
    sum_acc[...] += jnp.sum(chunk, axis=-1)                # (1, C)
    max_acc[...] = jnp.maximum(max_acc[...], jnp.max(chunk, axis=-1))

    @pl.when(k == pl.num_programs(1) - 1)
    def _():
        avg = sum_acc[...] * (1.0 / float(hw))             # (1, C)
        mx = max_acc[...]                                  # (1, C)
        # Fused shared-MLP: stack [avg; max] and run one matmul->ReLU->matmul.
        pooled = jnp.concatenate([avg, mx], axis=0)        # (2, C)
        w1t = w1t_ref[...].astype(jnp.float32)             # (C, C_red)
        w2t = w2t_ref[...].astype(jnp.float32)             # (C_red, C)
        h = jnp.dot(pooled, w1t, preferred_element_type=jnp.float32)   # (2, C_red)
        h = jnp.maximum(h, 0.0)
        logits = jnp.dot(h, w2t, preferred_element_type=jnp.float32)   # (2, C)
        att = jax.nn.sigmoid(logits[0:1, :] + logits[1:2, :])          # (1, C)
        out_ref[...] = att[None, :, :].astype(out_ref.dtype)           # (1, 1, C)


def _choose_hw_chunk(hw, target=2048):
    """Pick an HW chunk that divides HW exactly (no padded garbage in the max
    reduction) and stays modest so double-buffered tiles fit every
    generation's scoped VMEM (16 MiB v5e / 32 MiB v6e, v7x)."""
    if hw <= target:
        return hw
    # Prefer lane-aligned (multiple of 128) divisors, largest first.
    for cand in range(target - target % 128, 127, -128):
        if hw % cand == 0:
            return cand
    # Fall back to the largest divisor <= target.
    for cand in range(target, 0, -1):
        if hw % cand == 0:
            return cand
    return hw


def channel_attention(x_nchw, w1, w2, *, hw_chunk=None):
    """x_nchw: [B, C, H, W]; w1: [C_red, C]; w2: [C, C_red] -> [B, C, 1, 1]"""
    B, C, H, W = x_nchw.shape
    HW = H * W
    c_red = w1.shape[0]

    x_flat = x_nchw.reshape(B, C, HW)
    # Pre-transpose in the wrapper so the MXU consumes lane-contiguous RHS and
    # the kernel does no XLU transposes.
    w1_t = jnp.transpose(w1)        # (C, C_red)
    w2_t = jnp.transpose(w2)        # (C_red, C)

    if hw_chunk is None:
        hw_chunk = _choose_hw_chunk(HW)
    num_chunks = HW // hw_chunk
    assert num_chunks * hw_chunk == HW, "hw_chunk must divide H*W"

    dtype_bytes = jnp.dtype(x_nchw.dtype).itemsize
    cost = pl.CostEstimate(
        flops=B * (2 * C * HW + 8 * C * c_red),   # reductions + tiny fused MLP
        transcendentals=B * C,                    # sigmoid
        bytes_accessed=B * C * HW * dtype_bytes + B * C * dtype_bytes,
    )

    kernel = functools.partial(_channel_attention_kernel, hw=HW)

    out = pl.pallas_call(
        kernel,
        out_shape=jax.ShapeDtypeStruct((B, 1, C), x_nchw.dtype),
        grid_spec=pltpu.PrefetchScalarGridSpec(
            num_scalar_prefetch=0,
            grid=(B, num_chunks),
            in_specs=[
                # One batch row, one spatial chunk per grid step (streamed).
                pl.BlockSpec((1, C, hw_chunk), lambda b, k: (b, 0, k)),
                # Weights: constant index_map -> DMA'd once, kept resident.
                pl.BlockSpec((C, c_red), lambda b, k: (0, 0)),
                pl.BlockSpec((c_red, C), lambda b, k: (0, 0)),
            ],
            out_specs=pl.BlockSpec((1, 1, C), lambda b, k: (b, 0, 0)),
            scratch_shapes=[
                pltpu.VMEM((1, C), jnp.float32),   # running sum
                pltpu.VMEM((1, C), jnp.float32),   # running max
            ],
        ),
        compiler_params=pltpu.CompilerParams(
            dimension_semantics=("parallel", "arbitrary"),
        ),
        cost_estimate=cost,
    )(x_flat, w1_t, w2_t)

    return out.reshape(B, C, 1, 1)


def init_params(key, channels, reduction_ratio):
    """Deterministic Conv2d-style (kaiming_uniform, a=sqrt(5)) init for the
    two 1x1 convs; kernel_size=1 so weights collapse to matrices."""
    c_red = channels // reduction_ratio
    k1, k2 = jax.random.split(key)
    bound1 = 1.0 / jnp.sqrt(jnp.float32(channels))   # fan_in = channels * 1 * 1
    bound2 = 1.0 / jnp.sqrt(jnp.float32(c_red))      # fan_in = c_red * 1 * 1
    w1 = jax.random.uniform(k1, (c_red, channels), jnp.float32, -bound1, bound1)
    w2 = jax.random.uniform(k2, (channels, c_red), jnp.float32, -bound2, bound2)
    return w1, w2


if __name__ == "__main__":
    # Small shapes consistent with the module: reduction_ratio=4 so that
    # channels // reduction_ratio > 0 at a small channel count.
    B, C, H, W = 2, 32, 16, 16
    reduction_ratio = 4

    key = jax.random.PRNGKey(0)
    kx, kp = jax.random.split(key)
    x = jax.random.normal(kx, (B, C, H, W), dtype=jnp.float32)
    w1, w2 = init_params(kp, C, reduction_ratio)

    # hw_chunk=128 exercises the multi-chunk streaming reduction (HW=256 -> 2
    # chunks per batch row).
    attn = channel_attention(x, w1, w2, hw_chunk=128)
    jax.block_until_ready(attn)

    # Pure-JAX reference check of the same forward pass.
    avg = jnp.mean(x.reshape(B, C, -1), axis=-1)
    mx = jnp.max(x.reshape(B, C, -1), axis=-1)
    mlp = lambda v: jnp.maximum(v @ w1.T, 0.0) @ w2.T
    ref = jax.nn.sigmoid(mlp(avg) + mlp(mx)).reshape(B, C, 1, 1)
    assert attn.shape == (B, C, 1, 1)
    assert jnp.allclose(attn, ref, atol=1e-5, rtol=1e-5)

    print("KERNEL_OK")
</pallas_src>

<mosaic_0001>
module attributes {stable_mosaic.version = 11 : i64} {
  func.func @_channel_attention_kernel(%arg0: i32, %arg1: i32, %arg2: memref<1x32x128xf32, #tpu.memory_space<vmem>>, %arg3: memref<32x8xf32, #tpu.memory_space<vmem>>, %arg4: memref<8x32xf32, #tpu.memory_space<vmem>>, %arg5: memref<1x1x32xf32, #tpu.memory_space<vmem>>, %arg6: memref<1x32xf32, #tpu.memory_space<vmem>>, %arg7: memref<1x32xf32, #tpu.memory_space<vmem>>) attributes {dimension_semantics = [#tpu.dimension_semantics<parallel>, #tpu.dimension_semantics<arbitrary>], iteration_bounds = array<i64: 2, 2>, scalar_prefetch = 0 : i64, scratch_operands = 2 : i64, tpu.core_type = #tpu.core_type<tc>, window_params = [{transform_indices = @transform_0, window_bounds = array<i64: 1, 32, 128>}, {pipeline_mode = #tpu.pipeline_mode<synchronous>, transform_indices = @transform_1, window_bounds = array<i64: 32, 8>}, {pipeline_mode = #tpu.pipeline_mode<synchronous>, transform_indices = @transform_2, window_bounds = array<i64: 8, 32>}, {transform_indices = @transform_3, window_bounds = array<i64: 1, 1, 32>}]} {
    %c0_i32 = arith.constant 0 : i32
    %0 = arith.cmpi eq, %arg1, %c0_i32 : i32
    %1 = arith.extui %0 : i1 to i32
    %c0_i32_0 = arith.constant 0 : i32
    %2 = arith.cmpi ne, %1, %c0_i32_0 : i32
    scf.if %2 {
      %cst_13 = arith.constant 0.000000e+00 : f32
      %15 = vector.broadcast %cst_13 : f32 to vector<1x32xf32>
      %c0_14 = arith.constant 0 : index
      %c0_15 = arith.constant 0 : index
      %16 = vector.load %arg6[%c0_14, %c0_15] : memref<1x32xf32, #tpu.memory_space<vmem>>, vector<1x32xf32>
      tpu.vector_store %arg6[%c0_14, %c0_15], %15 {strides = array<i32>} : memref<1x32xf32, #tpu.memory_space<vmem>>, vector<1x32xf32>,
      %cst_16 = arith.constant 0xFF800000 : f32
      %17 = vector.broadcast %cst_16 : f32 to vector<1x32xf32>
      %c0_17 = arith.constant 0 : index
      %c0_18 = arith.constant 0 : index
      %18 = vector.load %arg7[%c0_17, %c0_18] : memref<1x32xf32, #tpu.memory_space<vmem>>, vector<1x32xf32>
      tpu.vector_store %arg7[%c0_17, %c0_18], %17 {strides = array<i32>} : memref<1x32xf32, #tpu.memory_space<vmem>>, vector<1x32xf32>,
    } else {
    }
    %c0 = arith.constant 0 : index
    %c0_1 = arith.constant 0 : index
    %c0_2 = arith.constant 0 : index
    %3 = vector.load %arg2[%c0, %c0_1, %c0_2] : memref<1x32x128xf32, #tpu.memory_space<vmem>>, vector<1x32x128xf32>
    %c0_3 = arith.constant 0 : index
    %c0_4 = arith.constant 0 : index
    %4 = vector.load %arg6[%c0_3, %c0_4] : memref<1x32xf32, #tpu.memory_space<vmem>>, vector<1x32xf32>
    %cst = arith.constant dense<0.000000e+00> : vector<1x32xf32>
    %5 = vector.multi_reduction <add>, %3, %cst [2] : vector<1x32x128xf32> to vector<1x32xf32>
    %6 = arith.addf %4, %5 : vector<1x32xf32>
    %c0_5 = arith.constant 0 : index
    %c0_6 = arith.constant 0 : index
    %7 = vector.load %arg6[%c0_5, %c0_6] : memref<1x32xf32, #tpu.memory_space<vmem>>, vector<1x32xf32>
    tpu.vector_store %arg6[%c0_5, %c0_6], %6 {strides = array<i32>} : memref<1x32xf32, #tpu.memory_space<vmem>>, vector<1x32xf32>,
    %c0_7 = arith.constant 0 : index
    %c0_8 = arith.constant 0 : index
    %8 = vector.load %arg7[%c0_7, %c0_8] : memref<1x32xf32, #tpu.memory_space<vmem>>, vector<1x32xf32>
    %cst_9 = arith.constant dense<0xFF800000> : vector<1x32xf32>
    %9 = vector.multi_reduction <maximumf>, %3, %cst_9 [2] : vector<1x32x128xf32> to vector<1x32xf32>
    %10 = arith.maximumf %8, %9 : vector<1x32xf32>
    %c0_10 = arith.constant 0 : index
    %c0_11 = arith.constant 0 : index
    %11 = vector.load %arg7[%c0_10, %c0_11] : memref<1x32xf32, #tpu.memory_space<vmem>>, vector<1x32xf32>
    tpu.vector_store %arg7[%c0_10, %c0_11], %10 {strides = array<i32>} : memref<1x32xf32, #tpu.memory_space<vmem>>, vector<1x32xf32>,
    %c1_i32 = arith.constant 1 : i32
    %12 = arith.cmpi eq, %arg1, %c1_i32 : i32
    %13 = arith.extui %12 : i1 to i32
    %c0_i32_12 = arith.constant 0 : i32
    %14 = arith.cmpi ne, %13, %c0_i32_12 : i32
    scf.if %14 {
      %c0_13 = arith.constant 0 : index
      %c0_14 = arith.constant 0 : index
      %15 = vector.load %arg6[%c0_13, %c0_14] : memref<1x32xf32, #tpu.memory_space<vmem>>, vector<1x32xf32>
      %cst_15 = arith.constant 3.906250e-03 : f32
      %16 = vector.broadcast %cst_15 : f32 to vector<1x32xf32>
      %17 = arith.mulf %15, %16 : vector<1x32xf32>
      %c0_16 = arith.constant 0 : index
      %c0_17 = arith.constant 0 : index
      %18 = vector.load %arg7[%c0_16, %c0_17] : memref<1x32xf32, #tpu.memory_space<vmem>>, vector<1x32xf32>
      %19 = tpu.concatenate %17, %18 in 0 : vector<1x32xf32>, vector<1x32xf32> -> vector<2x32xf32>
      %c0_18 = arith.constant 0 : index
      %c0_19 = arith.constant 0 : index
      %20 = vector.load %arg3[%c0_18, %c0_19] : memref<32x8xf32, #tpu.memory_space<vmem>>, vector<32x8xf32>
      %c0_20 = arith.constant 0 : index
      %c0_21 = arith.constant 0 : index
      %21 = vector.load %arg4[%c0_20, %c0_21] : memref<8x32xf32, #tpu.memory_space<vmem>>, vector<8x32xf32>
      %cst_22 = arith.constant dense<0.000000e+00> : vector<2x8xf32>
      %22 = tpu.matmul %19, %20, %cst_22 {dimension_numbers = #tpu.dot_dimension_numbers<[1], [0], [0], [1], [0, 0, 1, 1], [], []>} : vector<2x32xf32>, vector<32x8xf32>, vector<2x8xf32> -> vector<2x8xf32>
      %cst_23 = arith.constant 0.000000e+00 : f32
      %23 = vector.broadcast %cst_23 : f32 to vector<2x8xf32>
      %24 = arith.maximumf %22, %23 : vector<2x8xf32>
      %cst_24 = arith.constant dense<0.000000e+00> : vector<2x32xf32>
      %25 = tpu.matmul %24, %21, %cst_24 {dimension_numbers = #tpu.dot_dimension_numbers<[1], [0], [0], [1], [0, 0, 1, 1], [], []>} : vector<2x8xf32>, vector<8x32xf32>, vector<2x32xf32> -> vector<2x32xf32>
      %26 = vector.extract_strided_slice %25 {offsets = [0, 0], sizes = [1, 32], strides = [1, 1]} : vector<2x32xf32> to vector<1x32xf32>
      %27 = vector.extract_strided_slice %25 {offsets = [1, 0], sizes = [1, 32], strides = [1, 1]} : vector<2x32xf32> to vector<1x32xf32>
      %28 = arith.addf %26, %27 : vector<1x32xf32>
      %29 = arith.negf %28 : vector<1x32xf32>
      %30 = math.exp %29 : vector<1x32xf32>
      %cst_25 = arith.constant 1.000000e+00 : f32
      %31 = vector.broadcast %cst_25 : f32 to vector<1x32xf32>
      %32 = arith.addf %31, %30 : vector<1x32xf32>
      %33 = arith.divf %31, %32 : vector<1x32xf32>
      %34 = vector.shape_cast %33 : vector<1x32xf32> to vector<1x1x32xf32>
      %c0_26 = arith.constant 0 : index
      %c0_27 = arith.constant 0 : index
      %c0_28 = arith.constant 0 : index
      %35 = vector.load %arg5[%c0_26, %c0_27, %c0_28] : memref<1x1x32xf32, #tpu.memory_space<vmem>>, vector<1x1x32xf32>
      tpu.vector_store %arg5[%c0_26, %c0_27, %c0_28], %34 {strides = array<i32>} : memref<1x1x32xf32, #tpu.memory_space<vmem>>, vector<1x1x32xf32>,
    } else {
    }
    return
  }
  func.func @transform_0(%arg0: i32, %arg1: i32) -> (i32, i32, i32) {
    %c0_i32 = arith.constant 0 : i32
    %c0_i32_0 = arith.constant 0 : i32
    return %arg0, %c0_i32, %arg1 : i32, i32, i32
  }
  func.func @transform_1(%arg0: i32, %arg1: i32) -> (i32, i32) {
    %c0_i32 = arith.constant 0 : i32
    %c0_i32_0 = arith.constant 0 : i32
    %c0_i32_1 = arith.constant 0 : i32
    return %c0_i32, %c0_i32_0 : i32, i32
  }
  func.func @transform_2(%arg0: i32, %arg1: i32) -> (i32, i32) {
    %c0_i32 = arith.constant 0 : i32
    %c0_i32_0 = arith.constant 0 : i32
    %c0_i32_1 = arith.constant 0 : i32
    return %c0_i32, %c0_i32_0 : i32, i32
  }
  func.func @transform_3(%arg0: i32, %arg1: i32) -> (i32, i32, i32) {
    %c0_i32 = arith.constant 0 : i32
    %c0_i32_0 = arith.constant 0 : i32
    %c0_i32_1 = arith.constant 0 : i32
    return %arg0, %c0_i32, %c0_i32_0 : i32, i32, i32
  }
}

</mosaic_0001>

<bundles_post_ra>
// kernel: tpu_custom_call.1
= control target key start
LH: loop header
LB: loop body
LE: loop exit
PB: predicated region body
PF: predicated region fallthrough
CT: control target
= control target key end

     0   :  { %8 = vsyncpa [#allocation5], 0  ;;  %s1965_s0 = inlined_call_operand.hbm [shape: f32[2,32,256], index: 0, kind: input, shape index: {}]   ;;  %s1966_s1 = inlined_call_operand.vmem [shape: f32[32,8], index: 1, kind: input, shape index: {}]   ;;  %s1967_s2 = inlined_call_operand.vmem [shape: f32[8,32], index: 2, kind: input, shape index: {}]   ;;  %s1968_s3 = inlined_call_operand.hbm [shape: f32[2,1,32], index: 3, kind: output, shape index: {}]  }
   0x1   :  { %10 = vsyncpa [#allocation5 + $0x1], 0 }
   0x2   :  { %11 = vsyncpa [#allocation6], 0 }
   0x3   :  { %13 = vsyncpa [#allocation6 + $0x1], 0  ;;  %s1604_s12 = smov 0   ;;  %s1606_s13 = smov 0  }
   0x4   :  { %s1608_s14 = smov 0   ;;  %s1610_s15 = smov 0  }
   0x5   :  { %s1612_s16 = smov 0   ;;  %s1614_s17 = smov 0  }
   0x6   :  { %s1616_s18 = smov 0   ;;  %s1618_s19 = smov 0  }
   0x7   :  { %s1620_s20 = smov 0   ;;  %s1622_s21 = smov 0  }
   0x8   :  { %s1624_s22 = smov 0  }
   0x9 LB: > { %1972 = sst [smem:[#allocation10_spill]] %s1551_s17  ;;  %s1265_s23 = sadd.s32 4294967295, %s1571_s22   ;;  %s1571_s22 = sphi %s1624_s22, %s19_s22   ;;  %s1567_s21 = sphi %s1622_s21, %s1993_s21   ;;  %s1563_s20 = sphi %s1620_s20, %s1992_s20   ;;  %s1559_s19 = sphi %s1618_s19, %s1991_s19   ;;  %s1555_s18 = sphi %s1616_s18, %s1990_s18   ;;  %s1551_s17 = sphi %s1614_s17, %s1982_s17   ;;  %s1547_s16 = sphi %s1612_s16, %s1989_s16   ;;  %s1543_s15 = sphi %s1610_s15, %s1988_s15   ;;  %s1539_s14 = sphi %s1608_s14, %s1987_s14   ;;  %s1535_s13 = sphi %s1606_s13, %s1986_s13   ;;  %s1531_s12 = sphi %s1604_s12, %s1985_s12  }
   0xa   : > { %s1266_s24 = sadd.s32 4294967294, %s1571_s22   ;;  %s28_s25 = sadd.s32 1, %s1563_s20 }
   0xb   : > { %s31_s26 = sadd.s32 1, %s1567_s21  ;;  %p29_p0 = scmp.ge.s32.totalorder %s28_s25, 2 }
   0xc   : > { %s40_s27 = sadd.s32 1, %s1551_s17  ;;  %p47_p1 = scmp.ne.s32.totalorder %s1551_s17, %s1547_s16 }
   0xd   : > { %p48_p2 = scmp.eq.s32.totalorder %s1571_s22, 0  ;;  %s1995_s25 = smov (%p29_p0, %s28_s25), 0 }
   0xe   : > { %1973 = sst [smem:[#allocation11_spill]] %s1995_s25  ;;  %s1997_s26 = smov (!%p29_p0, %s31_s26), %s1567_s21 }
   0xf   : > { %s36_s28 = ssub.s32 %s1563_s20, %s1995_s25  ;;  %p1670_p3 = por %p48_p2, %p47_p1 }
  0x10   : > { %p33_p4 = scmp.ge.s32.totalorder %s1997_s26, 2  ;;  %p53_p5 = scmp.ne.s32.totalorder %s1547_s16, %s1543_s15 }
  0x11   : > { %p54_p6 = scmp.eq.s32.totalorder %s1265_s23, 0  ;;  %s108_s30 = sadd.s32 1, %s1539_s14 }
  0x12   : > { %s1999_s26 = smov (%p33_p4, %s1997_s26), 0  ;;  %p118_p8 = scmp.ne.s32.totalorder %s1539_s14, %s1535_s13 }
  0x13   : > { %1975 = sst [smem:[#allocation12_spill]] %s1999_s26  ;;  %p1678_p7 = por %p54_p6, %p53_p5 }
  0x14   : > { %s35_s5 = ssub.s32 %s1567_s21, %s1999_s26  ;;  %p119_p9 = scmp.eq.s32.totalorder %s1265_s23, 3 }
  0x15   : > { %s37_s6 = sor.u32 %s36_s28, %s35_s5  ;;  %p106_p10 = scmp.eq.s32.totalorder %s35_s5, 0 }
  0x16   : > { %p38_p11 = scmp.eq.s32.totalorder %s37_s6, 0  ;;  %p1686_p12 = por %p119_p9, %p118_p8 }
  0x17   : > { %s1691_s8 = scalar_select %p106_p10, %s1539_s14, %s108_s30  }
  0x18   : > { %s1694_s9 = scalar_select %p38_p11, %s1551_s17, %s40_s27  }
  0x19   : > { %p124_p13 = scmp.ne.s32.totalorder %s1535_s13, %s1531_s12  ;;  %p125_p0 = scmp.eq.s32.totalorder %s1266_s24, 3 }
  0x1a   : > { %1978 = sst [smem:[#allocation13_spill]] %s1694_s9  ;;  %p1318_p1 = scmp.lt.s32.totalorder %s1571_s22, 4 }
  0x1b   : > { %p1699_p2 = por %p125_p0, %p124_p13  ;;  %s151_s11 = sand.u32 1, %s1551_s17  }
  0x1c   : > { %s1269_s15 = sshll.u32 %s151_s11, 5  ;;  %s1270_s23 = sshll.u32 %s1567_s21, 3 }
  0x1d   : > { %s160_s28 = sadd.s32 %s1563_s20, %s1270_s23  ;;  %s155_s5 = scalar_lea.vmem [#allocation4], %s1269_s15 }
  0x1e   : > { %s163_s6 = sshll.u32 %s155_s5, 4  ;;  %s1271_s26 = sshll.u32 %s160_s28, 7  ;;  %s164_s6 = int_to_ptr.vmem [resolvable:$true] %s163_s6 }
  0x1f   : > { %s162_s27 = scalar_lea.hbm %s1965_s0, %s1271_s26  ;;  %p1711_p4 = pnand %p1318_p1, %p1670_p3 }
  0x20   : > { %s152_s9 = scalar_lea.sflag [#allocation5], %s151_s11  ;;  %s1436_s17 = scalar_lea.vmem %s164_s6, 512 }
  0x21   : > { %p1425_p5 = pneg %p1711_p4  ;;  %p1437_p6 = scmp.ne.s32.totalorder %s164_s6, %s1436_s17 }
  0x22   : > { %s1573_s15 = smov [#allocation4]  }
  0x23   : > { %p1439_p8 = pnand %p1437_p6, %p1425_p5  ;;  %s1441_s23 = sshll.u32 %s1573_s15, 4  ;;  %s1442_s23 = int_to_ptr.vmem [resolvable:$false] %s1441_s23 }
  0x24   : > { %s1443_s28 = scalar_lea.vmem %s1442_s23, 1024  ;;  %p1444_p10 = scmp.lt.s32.totalorder %s164_s6, %s1442_s23 }
  0x25   : > { %p1440_p9 = pneg %p1439_p8  ;;  %p1445_p11 = scmp.lt.s32.totalorder %s1443_s28, %s1436_s17 }
  0x27   : > { %p1446_p13 = por %p1445_p11, %p1444_p10 }
  0x29   : > { %p1447_p0 = pnand %p1446_p13, %p1440_p9 }
  0x2b   : > { %1450 = shalt.err (!%p1447_p0)
}
  0x2c   : > { %s1574_s25 = smov 256   ;;  %s1575_s26 = smov 128  }
  0x2d   : > { %s1576_s29 = smov 8   ;;  %p1272_p3 = scmp.ge.s32.totalorder %s1571_s22, 1 }
  0x2e   : > { %1313 = dma.hbm_to_vmem [thread:$0]  (!%p1711_p4), %s162_s27, 512, %s164_s6, %s152_s9, %s1574_s25, %s1575_s26, %s1576_s29  }
  0x2f   : > { %p171_p1 = scmp.lt.s32.totalorder %s1571_s22, 5 }
  0x31   : > { %p172_p5 = pnand %p1272_p3, %p171_p1 }
  0x32   : > { %s177_s11 = sand.u32 (!%p172_p5), 1, %s1547_s16  }
  0x33   : > { %175 = sbr.rel (%p172_p5) target bundleno = 845 (0x34d), region = 32  ;;  %s1273_s5 = sshll.u32 (!%p172_p5), %s177_s11, 5 }
  0x34   : > { %s178_s17 = scalar_lea.sflag (!%p172_p5), [#allocation5], %s177_s11  ;;  %s181_s30 = scalar_lea.vmem (!%p172_p5), [#allocation4], %s1273_s5 }
  0x38   : > { %1522 = dma.done.wait (%p1678_p7), %s178_s17, 512  }
  0x39   : > { %1524 = vsyncadd (%p1678_p7), %s178_s17, 4294966784  ;;  %s201_s15 = sand.u32 1, %s1535_s13   ;;  %p1274_p4 = scmp.ne.s32.totalorder %s1555_s18, 0 }
  0x3a   : > { %s1729_s9 = scalar_lea.vmem [#allocation7], %s201_s15 }
  0x3b   : > { %206 = sbr.rel (%p1274_p4) target bundleno = 66 (0x42), region = 40 }
  0x40   : > { %vm207_vm0 = vcmask 253952   ;;  %v1577_v0 = vmov 0.0   ;;  %v1578_v1 = vmov -inf  }
  0x41   : > { %208 = vst.msk [vmem:[#allocation2] sm:$0x1] %vm207_vm0, %v1577_v0  ;;  %209 = vst.msk [vmem:[#allocation3] sm:$0x1] %vm207_vm0, %v1578_v1 }
  0x42 PF: > { %v210_v2 = vld [vmem:[%s181_s30] sm:$0xff]  ;;  %v211_v3 = vld [vmem:[%s181_s30 + $0x8] sm:$0xff]  ;;  %v212_v4 = vld [vmem:[%s181_s30 + $0x10] sm:$0xff]  ;;  %v1579_v6 = vmov 0   ;;  %v227_v7 = vlaneseq  ;;  %v1580_v8 = vmov 1966171168  }
  0x43   : > { %215 = vadd.xlane.f32.xlu0 %v210_v2  ;;  %609 = vmax.xlane.f32.xlu1 %v210_v2  ;;  %v213_v5 = vld [vmem:[%s181_s30 + $0x18] sm:$0xff]  ;;  %v360_v9 = vunpack.c.l.s4 %v1580_v8  ;;  %vm574_vm1 = vcmask 130112   ;;  %vm581_vm2 = vcmask 195712   ;;  %vm588_vm3 = vcmask 261312   ;;  %p1275_p7 = scmp.ne.s32.totalorder %s1555_s18, 1 }
  0x44   : > { %1417 = vset.pattern.permute.xlu0 %v1579_v6  ;;  %1418 = vset.pattern.permute.xlu1 %v1579_v6  ;;  %v1733_v10 = vshrl.u32 %v227_v7, 7  ;;  %vm606_vm4 = vcmask 253952  }
  0x45   : > { %v361_v11 = vunpack.c.0.s8 %v360_v9 }
  0x46   : > { %v1736_v12 = vsub.s32 0, %v1733_v10  ;;  %v1739_v13 = vsub.s32 1, %v1733_v10  ;;  %v1742_v14 = vsub.s32 2, %v1733_v10  ;;  %v1745_v15 = vsub.s32 3, %v1733_v10 }
  0x47   : > { %217 = vadd.xlane.f32.xlu0 %v211_v3  ;;  %611 = vmax.xlane.f32.xlu1 %v211_v3  ;;  %v1748_v16 = vsub.s32 4, %v1733_v10  ;;  %v1751_v17 = vsub.s32 5, %v1733_v10  ;;  %v1754_v18 = vsub.s32 6, %v1733_v10  ;;  %v1757_v19 = vsub.s32 7, %v1733_v10 }
  0x48   : > { %v1760_v22 = vsub.s32 %v361_v11, %v1733_v10 }
  0x4b   : > { %219 = vadd.xlane.f32.xlu0 %v212_v4  ;;  %613 = vmax.xlane.f32.xlu1 %v212_v4 }
  0x4f   : > { %221 = vadd.xlane.f32.xlu0 %v213_v5  ;;  %615 = vmax.xlane.f32.xlu1 %v213_v5 }
  0xcc   : > { %v216_v20 = vpop.xlane.xlu0 %215  ;;  %v610_v21 = vpop.xlane.xlu1 %609 }
  0xcd   : > { %v230_v23 = vrot.slane %v216_v20, %v1736_v12  ;;  %v234_v24 = vrot.slane %v216_v20, %v1739_v13  ;;  %v238_v25 = vrot.slane %v216_v20, %v1742_v14  ;;  %v242_v26 = vrot.slane %v216_v20, %v1745_v15 }
  0xce   : > { %v246_v27 = vrot.slane %v216_v20, %v1748_v16  ;;  %v250_v28 = vrot.slane %v216_v20, %v1751_v17  ;;  %v254_v29 = vrot.slane %v216_v20, %v1754_v18  ;;  %v258_v30 = vrot.slane %v216_v20, %v1757_v19 }
  0xcf   : > { %v355_v31 = vcombine.low %v230_v23, %v234_v24  ;;  %v356_v32 = vcombine.low %v238_v25, %v242_v26  ;;  %v624_v33 = vrot.slane %v610_v21, %v1736_v12  ;;  %v628_v34 = vrot.slane %v610_v21, %v1739_v13 }
  0xd0   : > { %v218_v35 = vpop.xlane.xlu0 %217  ;;  %v357_v36 = vcombine.low %v246_v27, %v250_v28  ;;  %v358_v37 = vcombine.low %v254_v29, %v258_v30  ;;  %v632_v38 = vrot.slane %v610_v21, %v1742_v14  ;;  %v636_v39 = vrot.slane %v610_v21, %v1745_v15  ;;  %v612_v60 = vpop.xlane.xlu1 %611 }
  0xd1   : > { %v365_v40 = vrot.slane %v355_v31, %v1760_v22  ;;  %v372_v41 = vrot.slane %v356_v32, %v1760_v22  ;;  %v262_v42 = vrot.slane %v218_v35, %v1736_v12  ;;  %v266_v43 = vrot.slane %v218_v35, %v1739_v13 }
  0xd2   : > { %v379_v44 = vrot.slane %v357_v36, %v1760_v22  ;;  %v386_v45 = vrot.slane %v358_v37, %v1760_v22  ;;  %v270_v46 = vrot.slane %v218_v35, %v1742_v14  ;;  %v274_v47 = vrot.slane %v218_v35, %v1745_v15 }
  0xd3   : > { %v387_v48 = vcombine.low %v365_v40, %v372_v41  ;;  %v278_v49 = vrot.slane %v218_v35, %v1748_v16  ;;  %v282_v50 = vrot.slane %v218_v35, %v1751_v17  ;;  %v286_v51 = vrot.slane %v218_v35, %v1754_v18 }
  0xd4   : > { %v388_v52 = vcombine.low %v379_v44, %v386_v45  ;;  %v290_v53 = vrot.slane %v218_v35, %v1757_v19  ;;  %v404_v54 = vcombine.low %v262_v42, %v266_v43  ;;  %v405_v55 = vcombine.low %v270_v46, %v274_v47  ;;  %v220_v32 = vpop.xlane.xlu0 %219 }
  0xd5   : > { %v395_v56 = vrot.slane %v387_v48, %v1760_v22  ;;  %v406_v57 = vcombine.low %v278_v49, %v282_v50  ;;  %v640_v58 = vrot.slane %v610_v21, %v1748_v16  ;;  %v644_v59 = vrot.slane %v610_v21, %v1751_v17  ;;  %v614_v49 = vpop.xlane.xlu1 %613 }
  0xd6   : > { %v402_v61 = vrot.slane %v388_v52, %v1760_v22  ;;  %v407_v62 = vcombine.low %v286_v51, %v290_v53  ;;  %v414_v63 = vrot.slane %v404_v54, %v1760_v22  ;;  %v421_v0 = vrot.slane %v405_v55, %v1760_v22 }
  0xd7   : > { %v428_v1 = vrot.slane %v406_v57, %v1760_v22  ;;  %v648_v2 = vrot.slane %v610_v21, %v1754_v18  ;;  %v652_v3 = vrot.slane %v610_v21, %v1757_v19  ;;  %v749_v4 = vcombine.low %v624_v33, %v628_v34 }
  0xd8   : > { %v403_v5 = vcombine.low %v395_v56, %v402_v61  ;;  %v435_v6 = vrot.slane %v407_v62, %v1760_v22  ;;  %v436_v8 = vcombine.low %v414_v63, %v421_v0  ;;  %v750_v9 = vcombine.low %v632_v38, %v636_v39 }
  0xd9   : > { %v751_v11 = vcombine.low %v640_v58, %v644_v59  ;;  %v752_v20 = vcombine.low %v648_v2, %v652_v3  ;;  %v759_v23 = vrot.slane %v749_v4, %v1760_v22  ;;  %v656_v24 = vrot.slane %v612_v60, %v1736_v12 }
  0xda   : > { %552 = vperm.xlu0 %1417, %v403_v5   ;;  %v437_v25 = vcombine.low %v428_v1, %v435_v6  ;;  %v444_v26 = vrot.slane %v436_v8, %v1760_v22  ;;  %v766_v27 = vrot.slane %v750_v9, %v1760_v22  ;;  %v660_v21 = vrot.slane %v612_v60, %v1739_v13 }
  0xdb   : > { %v773_v28 = vrot.slane %v751_v11, %v1760_v22  ;;  %v780_v29 = vrot.slane %v752_v20, %v1760_v22  ;;  %v664_v30 = vrot.slane %v612_v60, %v1742_v14  ;;  %v668_v31 = vrot.slane %v612_v60, %v1745_v15  ;;  %v222_v20 = vpop.xlane.xlu0 %221 }
  0xdc   : > { %v451_v33 = vrot.slane %v437_v25, %v1760_v22  ;;  %v781_v34 = vcombine.low %v759_v23, %v766_v27  ;;  %v672_v35 = vrot.slane %v612_v60, %v1748_v16  ;;  %v676_v36 = vrot.slane %v612_v60, %v1751_v17 }
  0xdd   : > { %v782_v37 = vcombine.low %v773_v28, %v780_v29  ;;  %v680_v38 = vrot.slane %v612_v60, %v1754_v18  ;;  %v684_v39 = vrot.slane %v612_v60, %v1757_v19  ;;  %v798_v40 = vcombine.low %v656_v24, %v660_v21 }
  0xde   : > { %v452_v41 = vcombine.low %v444_v26, %v451_v33  ;;  %v789_v42 = vrot.slane %v781_v34, %v1760_v22  ;;  %v799_v43 = vcombine.low %v664_v30, %v668_v31  ;;  %v800_v44 = vcombine.low %v672_v35, %v676_v36 }
  0xdf   : > { %v796_v45 = vrot.slane %v782_v37, %v1760_v22  ;;  %v801_v46 = vcombine.low %v680_v38, %v684_v39  ;;  %v808_v47 = vrot.slane %v798_v40, %v1760_v22  ;;  %v294_v48 = vrot.slane %v220_v32, %v1736_v12 }
  0xe0   : > { %555 = vperm.xlu1 %1418, %v452_v41   ;;  %v815_v50 = vrot.slane %v799_v43, %v1760_v22  ;;  %v822_v51 = vrot.slane %v800_v44, %v1760_v22  ;;  %v298_v52 = vrot.slane %v220_v32, %v1739_v13  ;;  %v302_v53 = vrot.slane %v220_v32, %v1742_v14 }
  0xe1   : > { %v797_v54 = vcombine.low %v789_v42, %v796_v45  ;;  %v829_v55 = vrot.slane %v801_v46, %v1760_v22  ;;  %v306_v56 = vrot.slane %v220_v32, %v1745_v15  ;;  %v310_v57 = vrot.slane %v220_v32, %v1748_v16  ;;  %v616_v42 = vpop.xlane.xlu1 %615 }
  0xe2   : > { %v830_v58 = vcombine.low %v808_v47, %v815_v50  ;;  %v314_v59 = vrot.slane %v220_v32, %v1751_v17  ;;  %v318_v60 = vrot.slane %v220_v32, %v1754_v18  ;;  %v322_v61 = vrot.slane %v220_v32, %v1757_v19 }
  0xe3   : > { %v831_v62 = vcombine.low %v822_v51, %v829_v55  ;;  %v453_v63 = vcombine.low %v294_v48, %v298_v52  ;;  %v454_v0 = vcombine.low %v302_v53, %v306_v56  ;;  %v688_v1 = vrot.slane %v614_v49, %v1736_v12 }
  0xe4   : > { %946 = vperm.xlu1 %1418, %v797_v54   ;;  %v838_v2 = vrot.slane %v830_v58, %v1760_v22  ;;  %v455_v3 = vcombine.low %v310_v57, %v314_v59  ;;  %v456_v4 = vcombine.low %v318_v60, %v322_v61  ;;  %v692_v5 = vrot.slane %v614_v49, %v1739_v13 }
  0xe5   : > { %v845_v6 = vrot.slane %v831_v62, %v1760_v22  ;;  %v463_v8 = vrot.slane %v453_v63, %v1760_v22  ;;  %v470_v9 = vrot.slane %v454_v0, %v1760_v22  ;;  %v696_v11 = vrot.slane %v614_v49, %v1742_v14 }
  0xe6   : > { %v477_v23 = vrot.slane %v455_v3, %v1760_v22  ;;  %v484_v24 = vrot.slane %v456_v4, %v1760_v22  ;;  %v700_v25 = vrot.slane %v614_v49, %v1745_v15  ;;  %v704_v26 = vrot.slane %v614_v49, %v1748_v16 }
  0xe7   : > { %v846_v27 = vcombine.low %v838_v2, %v845_v6  ;;  %v485_v21 = vcombine.low %v463_v8, %v470_v9  ;;  %v708_v28 = vrot.slane %v614_v49, %v1751_v17  ;;  %v712_v29 = vrot.slane %v614_v49, %v1754_v18 }
  0xe8   : > { %v486_v30 = vcombine.low %v477_v23, %v484_v24  ;;  %v716_v31 = vrot.slane %v614_v49, %v1757_v19  ;;  %v847_v32 = vcombine.low %v688_v1, %v692_v5  ;;  %v848_v33 = vcombine.low %v696_v11, %v700_v25 }
  0xe9   : > { %949 = vperm.xlu1 %1418, %v846_v27   ;;  %v493_v34 = vrot.slane %v485_v21, %v1760_v22  ;;  %v849_v35 = vcombine.low %v704_v26, %v708_v28  ;;  %v326_v36 = vrot.slane %v222_v20, %v1736_v12  ;;  %v330_v37 = vrot.slane %v222_v20, %v1739_v13 }
  0xea   : > { %v500_v38 = vrot.slane %v486_v30, %v1760_v22  ;;  %v850_v39 = vcombine.low %v712_v29, %v716_v31  ;;  %v857_v40 = vrot.slane %v847_v32, %v1760_v22  ;;  %v864_v41 = vrot.slane %v848_v33, %v1760_v22 }
  0xeb   : > { %v871_v43 = vrot.slane %v849_v35, %v1760_v22  ;;  %v334_v44 = vrot.slane %v222_v20, %v1742_v14  ;;  %v338_v45 = vrot.slane %v222_v20, %v1745_v15  ;;  %v342_v46 = vrot.slane %v222_v20, %v1748_v16 }
  0xec   : > { %v501_v47 = vcombine.low %v493_v34, %v500_v38  ;;  %v878_v48 = vrot.slane %v850_v39, %v1760_v22  ;;  %v879_v49 = vcombine.low %v857_v40, %v864_v41  ;;  %v346_v50 = vrot.slane %v222_v20, %v1751_v17 }
  0xed   : > { %v350_v51 = vrot.slane %v222_v20, %v1754_v18  ;;  %v354_v52 = vrot.slane %v222_v20, %v1757_v19  ;;  %v502_v53 = vcombine.low %v326_v36, %v330_v37  ;;  %v503_v54 = vcombine.low %v334_v44, %v338_v45 }
  0xee   : > { %558 = vperm.xlu1 %1418, %v501_v47   ;;  %v880_v55 = vcombine.low %v871_v43, %v878_v48  ;;  %v887_v56 = vrot.slane %v879_v49, %v1760_v22  ;;  %v504_v57 = vcombine.low %v342_v46, %v346_v50  ;;  %v720_v58 = vrot.slane %v616_v42, %v1736_v12 }
  0xef   : > { %v505_v59 = vcombine.low %v350_v51, %v354_v52  ;;  %v512_v60 = vrot.slane %v502_v53, %v1760_v22  ;;  %v519_v61 = vrot.slane %v503_v54, %v1760_v22  ;;  %v724_v62 = vrot.slane %v616_v42, %v1739_v13 }
  0xf0   : > { %v894_v63 = vrot.slane %v880_v55, %v1760_v22  ;;  %v526_v0 = vrot.slane %v504_v57, %v1760_v22  ;;  %v728_v1 = vrot.slane %v616_v42, %v1742_v14  ;;  %v732_v2 = vrot.slane %v616_v42, %v1745_v15  ;;  %v214_v55 = vld [vmem:[#allocation2] sm:$0x1] }
  0xf1   : > { %v533_v3 = vrot.slane %v505_v59, %v1760_v22  ;;  %v534_v4 = vcombine.low %v512_v60, %v519_v61  ;;  %v736_v12 = vrot.slane %v616_v42, %v1748_v16  ;;  %v740_v5 = vrot.slane %v616_v42, %v1751_v17 }
  0xf2   : > { %v895_v6 = vcombine.low %v887_v56, %v894_v63  ;;  %v744_v8 = vrot.slane %v616_v42, %v1754_v18  ;;  %v748_v13 = vrot.slane %v616_v42, %v1757_v19  ;;  %v896_v9 = vcombine.low %v720_v58, %v724_v62  ;;  %v608_v63 = vld [vmem:[#allocation3] sm:$0x1] }
  0xf3   : > { %v535_v11 = vcombine.low %v526_v0, %v533_v3  ;;  %v542_v20 = vrot.slane %v534_v4, %v1760_v22  ;;  %v897_v23 = vcombine.low %v728_v1, %v732_v2  ;;  %v898_v14 = vcombine.low %v736_v12, %v740_v5 }
  0xf4   : > { %952 = vperm.xlu1 %1418, %v895_v6   ;;  %v899_v15 = vcombine.low %v744_v8, %v748_v13  ;;  %v906_v24 = vrot.slane %v896_v9, %v1760_v22  ;;  %v564_v33 = vand.u32 127, %v227_v7 }
  0xf5   : > { %v549_v25 = vrot.slane %v535_v11, %v1760_v22  ;;  %v913_v16 = vrot.slane %v897_v23, %v1760_v22  ;;  %v920_v17 = vrot.slane %v898_v14, %v1760_v22 }
  0xf6   : > { %v927_v18 = vrot.slane %v899_v15, %v1760_v22  ;;  %v569_v34 = vadd.s32 4294967288, %v564_v33  ;;  %v576_v36 = vadd.s32 4294967280, %v564_v33  ;;  %v583_v38 = vadd.s32 4294967272, %v564_v33 }
  0xf7   : > { %v550_v26 = vcombine.low %v542_v20, %v549_v25  ;;  %v928_v19 = vcombine.low %v906_v24, %v913_v16  ;;  %v567_v40 = vsub.s32 %v564_v33, %v1733_v10 }
  0xf8   : > { %v929_v27 = vcombine.low %v920_v17, %v927_v18  ;;  %v572_v37 = vsub.s32 %v569_v34, %v1733_v10  ;;  %v579_v39 = vsub.s32 %v576_v36, %v1733_v10  ;;  %v586_v44 = vsub.s32 %v583_v38, %v1733_v10 }
  0xf9   : > { %561 = vperm.xlu1 %1418, %v550_v26   ;;  %v936_v21 = vrot.slane %v928_v19, %v1760_v22 }
  0xfa   : > { %v943_v28 = vrot.slane %v929_v27, %v1760_v22 }
  0xfc   : > { %v944_v29 = vcombine.low %v936_v21, %v943_v28 }
  0xfe   : > { %955 = vperm.xlu1 %1418, %v944_v29  }
 0x155   : > { %v553_v42 = vpop.permute.xlu0 %552 }
 0x156   : > { %v568_v46 = vrot.slane %v553_v42, %v567_v40 }
 0x15b   : > { %v556_v30 = vpop.permute.xlu1 %555 }
 0x15c   : > { %v573_v43 = vrot.slane %v556_v30, %v572_v37 }
 0x15e   : > { %v575_v47 = vsel %vm574_vm1, %v573_v43, %v568_v46 }
 0x15f   : > { %v947_v31 = vpop.permute.xlu1 %946 }
 0x160   : > { %v960_v53 = vrot.slane %v947_v31, %v567_v40 }
 0x164   : > { %v950_v32 = vpop.permute.xlu1 %949 }
 0x165   : > { %v964_v49 = vrot.slane %v950_v32, %v572_v37 }
 0x167   : > { %v965_v56 = vsel %vm574_vm1, %v964_v49, %v960_v53 }
 0x169   : > { %v559_v35 = vpop.permute.xlu1 %558 }
 0x16a   : > { %v580_v45 = vrot.slane %v559_v35, %v579_v39 }
 0x16c   : > { %v582_v50 = vsel %vm581_vm2, %v580_v45, %v575_v47 }
 0x16f   : > { %v953_v41 = vpop.permute.xlu1 %952 }
 0x170   : > { %v969_v51 = vrot.slane %v953_v41, %v579_v39 }
 0x172   : > { %v970_v59 = vsel %vm581_vm2, %v969_v51, %v965_v56 }
 0x174   : > { %v562_v7 = vpop.permute.xlu1 %561 }
 0x175   : > { %v587_v48 = vrot.slane %v562_v7, %v586_v44 }
 0x177   : > { %v589_v52 = vsel %vm588_vm3, %v587_v48, %v582_v50 }
 0x178   : > { %v596_v54 = vrot.slane %v589_v52, %v1760_v22 }
 0x179   : > { %v956_v10 = vpop.permute.xlu1 %955 }
 0x17a   : > { %v603_v57 = vrot.slane %v596_v54, %v1760_v22  ;;  %v974_v58 = vrot.slane %v956_v10, %v586_v44 }
 0x17c   : > { %v605_v60 = vadd.f32 %v603_v57, %v214_v55  ;;  %v975_v61 = vsel %vm588_vm3, %v974_v58, %v970_v59 }
 0x17d   : > { %v982_v62 = vrot.slane %v975_v61, %v1760_v22 }
 0x17e   : > { %607 = vst.msk [vmem:[#allocation2] sm:$0x1] %vm606_vm4, %v605_v60 }
 0x17f   : > { %v989_v0 = vrot.slane %v982_v62, %v1760_v22  ;;  %996 = sbr.rel (%p1275_p7) target bundleno = 822 (0x336), region = 44 }
 0x181   : > { %v991_v1 = vmax.f32 %v608_v63, %v989_v0 }
 0x183   : > { %992 = vst.msk [vmem:[#allocation3] sm:$0x1] %vm606_vm4, %v991_v1 }
 0x184   : > { %v1011_v2 = vld [vmem:[%s1966_s1 + $0x18] sm:$0xff]  ;;  %v1581_v3 = vmov 0.0   ;;  %v1010_v4 = vld [vmem:[%s1966_s1 + $0x10] sm:$0xff]  ;;  %vm1582_vm5 = vmmov 0   ;;  %v1009_v5 = vld [vmem:[%s1966_s1 + $0x8] sm:$0xff]  ;;  %vm1006_vm6 = vcmask 1040384  }
 0x185   : > { %1290 = vmatprep.subr.mxu0 %v1581_v3  ;;  %1298 = vmatprep.mubr.msk.f32.mxu0 %vm1582_vm5, %v1581_v3  ;;  %v997_v12 = vld [vmem:[#allocation2] sm:$0x1]  ;;  %vm1013_vm7 = vcmask 261120   ;;  %vm1088_vm8 = vcmask 64512  }
 0x186   : > { %1291 = vmatpush3.msra.mxu0 %v1011_v2  ;;  %v998_v22 = vmul.f32 0.00390625, %v997_v12  ;;  %1301 = vmatprep.subr.mxu1 %v1581_v3  ;;  %v1008_v8 = vld [vmem:[%s1966_s1] sm:$0xff] }
 0x187   : > { %1292 = vmatprep.subr.mxu0 %v1581_v3  ;;  %1303 = vmatprep.mubr.msk.f32.mxu1 %vm1582_vm5, %v1581_v3  ;;  %v1012_v9 = vld [vmem:[%s1967_s2] sm:$0xff] }
 0x188   : > { %1293 = vmatpush3.msra.mxu0 %v1010_v4  ;;  %1302 = vmatpush3.msra.mxu1 %v1012_v9 }
 0x189   : > { %1294 = vmatprep.subr.mxu0 %v1581_v3 }
 0x18a   : > { %v1276_v6 = vld [vmem:[#allocation3] ss:$0 sm:$0xff]  ;;  %1295 = vmatpush3.msra.mxu0 %v1009_v5 }
 0x18b   : > { %v1007_v13 = vsel %vm1006_vm6, %v998_v22, %v1276_v6  ;;  %1296 = vmatprep.subr.mxu0 %v1581_v3 }
 0x18c   : > { %1297 = vmatpush3.msra.mxu0 %v1008_v8 }
 0x18d   : > { %1299 = vmatmul.mubr.msk.f32.vlgmr.msra.gmra.mxu0 %vm1013_vm7, %v1007_v13 }
 0x24d   : > { %v1083_v11 = vpop.f32.mrf.mxu0 }
 0x24e   : > { %v1087_v20 = vmax.f32 %v1083_v11, 0.0 }
 0x24f   : > { %v1300_v23 = vpop.f32.mrf.mxu0 }
 0x250   : > { %1304 = vmatmul.mubr.msk.f32.vlgmr.msra.gmra.mxu1 %vm1088_vm8, %v1087_v20 }
 0x310   : > { %v1158_v14 = vpop.f32.mrf.mxu1 }
 0x311   : > { %v1163_v15 = vrot.slane %v1158_v14, 1 }
 0x312   : > { %v1305_v24 = vpop.f32.mrf.mxu1 }
 0x313   : > { %v1165_v25 = vadd.f32 %v1163_v15, %v1158_v14 }
 0x315   : > { %v1279_v16 = vmul.f32 -1.442695, %v1165_v25 }
 0x317   : > { %1419 = vpow2.f32 %v1279_v16 }
 0x324   : > { %v1420_v17 = vpop.eup %1419 }
 0x325   : > { %v1169_v18 = vadd.f32 1.0, %v1420_v17 }
 0x327   : > { %1421 = vrcp.f32 %v1169_v18 }
 0x334   : > { %v1422_v26 = vpop.eup %1421 }
 0x335   : > { %1172 = vst.msk [vmem:[%s1729_s9] sm:$0x1] %vm606_vm4, %v1422_v26 }
 0x336 PF: > { %s1280_s11 = sshll.u32 %s1559_s19, 4  ;;  %s1186_s4 = sshll.u32 %s1729_s9, 4  ;;  %s1187_s4 = int_to_ptr.vmem [resolvable:$true] %s1186_s4 }
 0x337   : > { %s1184_s30 = scalar_lea.hbm %s1968_s3, %s1280_s11  ;;  %s1174_s6 = scalar_lea.sflag [#allocation6], %s201_s15 }
 0x338   : > { %s1451_s27 = scalar_lea.vmem %s1187_s4, 16  ;;  %s1583_s24 = smov [#allocation7]  }
 0x339   : > { %p1452_p6 = scmp.ne.s32.totalorder %s1187_s4, %s1451_s27  ;;  %s1455_s23 = sshll.u32 %s1583_s24, 4  ;;  %s1456_s23 = int_to_ptr.vmem [resolvable:$false] %s1455_s23 }
 0x33a   : > { %s1457_s18 = scalar_lea.vmem %s1456_s23, 32  ;;  %p1458_p10 = scmp.lt.s32.totalorder %s1187_s4, %s1456_s23 }
 0x33b   : > { %p1453_p8 = pnand %p1452_p6, %p1686_p12  ;;  %p1459_p11 = scmp.lt.s32.totalorder %s1457_s18, %s1451_s27 }
 0x33d   : > { %p1454_p9 = pneg %p1453_p8  ;;  %p1460_p13 = por %p1459_p11, %p1458_p10 }
 0x33f   : > { %p1461_p0 = pnand %p1460_p13, %p1454_p9 }
 0x341   : > { %1464 = shalt.err (!%p1461_p0)
}
 0x342   : > { %s1465_s19 = scalar_lea.hbm %s1184_s30, 16  ;;  %s1469_s28 = scalar_lea.hbm %s1968_s3, 32 }
 0x343   : > { %p1466_p3 = scmp.ne.s32.totalorder %s1184_s30, %s1465_s19  ;;  %p1470_p4 = scmp.lt.s32.totalorder %s1184_s30, %s1968_s3 }
 0x344   : > { %p1471_p7 = scmp.lt.s32.totalorder %s1469_s28, %s1465_s19 }
 0x345   : > { %p1467_p1 = pnand %p1466_p3, %p1686_p12 }
 0x346   : > { %p1472_p6 = por %p1471_p7, %p1470_p4 }
 0x347   : > { %p1468_p5 = pneg %p1467_p1 }
 0x349   : > { %p1473_p8 = pnand %p1472_p6, %p1468_p5 }
 0x34b   : > { %1476 = shalt.err (!%p1473_p8)
}
 0x34c   : > { %1308 = dma.vmem_to_hbm [thread:$0]  (%p1686_p12), %s1187_s4, 16, %s1184_s30, %s1174_s6  }
 0x34d PF: > { %p1319_p9 = scmp.ge.s32.totalorder %s1571_s22, 2  ;;  %s1198_s29 = sand.u32 1, %s1531_s12  }
 0x34e   : > { %s1199_s11 = scalar_lea.sflag [#allocation6], %s1198_s29 }
 0x34f   : > { %p1315_p10 = pnand %p1319_p9, %p1699_p2 }
 0x351   : > { %p1316_p11 = pneg %p1315_p10 }
 0x353   : > { %1526 = dma.done.wait (%p1316_p11), %s1199_s11, 16  }
 0x354   : > { %1528 = vsyncadd (%p1316_p11), %s1199_s11, 4294967280  ;;  %s19_s22 = sadd.s32 1, %s1571_s22   ;;  %s1981_s7 = sld [smem:[#allocation10_spill]] }
 0x355   : > { %p16_p13 = scmp.ge.s32.totalorder %s19_s22, 6   ;;  %s1982_s17 = sld [smem:[#allocation13_spill]] }
 0x356   : > { %s1983_s5 = sld [smem:[#allocation11_spill]]  ;;  %s1985_s12 = smov %s1535_s13 }
 0x357   : > { %s1984_s30 = sld [smem:[#allocation12_spill]]  ;;  %s1986_s13 = smov %s1539_s14 }
 0x358   : > { %s1987_s14 = smov %s1691_s8  ;;  %s1988_s15 = smov %s1547_s16 }
 0x359   : > { %s1990_s18 = smov %s1563_s20  ;;  %s1991_s19 = smov %s1567_s21 }
 0x35a   : > { %s1989_s16 = smov %s1981_s7  ;;  %18 = sbr.rel (!%p16_p13) target bundleno = 9 (0x9), region = 85 }
 0x35c   : > { %s1992_s20 = smov %s1983_s5 }
 0x35d   : > { %s1993_s21 = smov %s1984_s30 }
 0x35f   :  { %1203 = vsyncpa [#allocation5], 1 }
 0x360   :  { %1205 = vsyncpa [#allocation5 + $0x1], 1 }
 0x361   :  { %1206 = vsyncpa [#allocation6], 1 }
 0x362   :  { %1208 = vsyncpa [#allocation6 + $0x1], 1 }

</bundles_post_ra>
